<compile_context>
chip_gen: v7x
topology: tpu7x:2x2x1
jax: 0.10.0
libtpu: 0.0.40
codegen_flags: <defaults>
</compile_context>

<pallas_src>
import functools

import jax
import jax.numpy as jnp
from jax import lax
from jax.experimental import pallas as pl
from jax.experimental.pallas import tpu as pltpu


def _pick_tile(n, pref):
    """Largest TPU-friendly tile <= pref that divides n (or n itself)."""
    if n <= pref:
        return n
    if n % 128 == 0:
        start = (pref // 128) * 128
        for t in range(start, 0, -128):
            if n % t == 0:
                return t
    return n  # unaligned axis: take the whole extent (caller should pad)


# ---------------------------------------------------------------------------
# Kernel 1: per-source-node message projection for ALL ratings at once.
#   H[s, r*mp:(r+1)*mp] = c_src[s] * (feat[s] @ W_r)        (dropout = id)
# ---------------------------------------------------------------------------
def _gcmc_proj_kernel(feat_ref, w_ref, c_src_ref, h_ref):
    h = jnp.dot(feat_ref[...], w_ref[...], preferred_element_type=jnp.float32)
    h_ref[...] = (h * c_src_ref[...]).astype(h_ref.dtype)


def _project_messages(feat, w_all, c_src, *, tile_src):
    n_src, in_f = feat.shape
    msg_units = w_all.shape[1]
    t = _pick_tile(n_src, tile_src)
    assert n_src % t == 0

    return pl.pallas_call(
        _gcmc_proj_kernel,
        out_shape=jax.ShapeDtypeStruct((n_src, msg_units), jnp.float32),
        grid_spec=pltpu.PrefetchScalarGridSpec(
            num_scalar_prefetch=0,
            grid=(n_src // t,),
            in_specs=[
                pl.BlockSpec((t, in_f), lambda i: (i, 0)),
                pl.BlockSpec((in_f, msg_units), lambda i: (0, 0)),
                pl.BlockSpec((t, 1), lambda i: (i, 0)),
            ],
            out_specs=pl.BlockSpec((t, msg_units), lambda i: (i, 0)),
        ),
        compiler_params=pltpu.CompilerParams(
            dimension_semantics=("parallel",),
            vmem_limit_bytes=32 * 1024 * 1024,
        ),
    )(feat, w_all, c_src)


# ---------------------------------------------------------------------------
# Kernel 2: adjacency aggregation (stack over ratings) + fused dense Linear.
#   acc[d, r*mp:(r+1)*mp] += A_r(block)(.T) @ H_r(block)
#   out[d]                 = (c_dst[d] * acc[d]) @ fc_w.T + fc_b
# Grid: (dst_tiles, src_tiles); src is the reduction axis.
# ---------------------------------------------------------------------------
def _gcmc_agg_kernel(a_ref, h_ref, c_dst_ref, fcw_ref, fcb_ref, out_ref, acc_ref,
                     *, num_ratings, msg_per, transpose_a):
    s = pl.program_id(1)

    @pl.when(s == 0)
    def _():
        acc_ref[...] = jnp.zeros_like(acc_ref)

    h = h_ref[...]                               # (TS, R*mp), f32
    contribs = []
    for r in range(num_ratings):                 # R is tiny -> static unroll
        a_r = a_ref[r].astype(jnp.float32)       # bf16 (0/1) -> f32 is exact
        h_r = h[:, r * msg_per:(r + 1) * msg_per]
        if transpose_a:
            # a_r: (TS, TD); contract over the src axis (TN dims) -> (TD, mp).
            # MXU-native transposed contraction; no HBM transpose of A needed.
            c = lax.dot_general(a_r, h_r, (((0,), (0,)), ((), ())),
                                preferred_element_type=jnp.float32)
        else:
            # a_r: (TD, TS) @ (TS, mp) -> (TD, mp)
            c = jnp.dot(a_r, h_r, preferred_element_type=jnp.float32)
        contribs.append(c)
    # lane-dense (TD, R*mp) accumulation of the "stack" aggregation
    acc_ref[...] += jnp.concatenate(contribs, axis=1)

    @pl.when(s == pl.num_programs(1) - 1)
    def _():
        z = acc_ref[...] * c_dst_ref[...]        # dst normalizer c_i; agg_act = id
        out_ref[...] = (jnp.dot(z, fcw_ref[...], preferred_element_type=jnp.float32)
                        + fcb_ref[...]).astype(out_ref.dtype)   # out_act = id


def gcmc_direction(A, W, feat, c_src, c_dst, fc_w, fc_b, *,
                   transpose_a, tile_dst=256, tile_src=512):
    """One message direction of the GCMC layer.

    A      : (R, n_user, n_item) per-rating adjacency (bf16 or f32), native layout.
    W      : (R, in_f, msg_per)  per-rating GCMCGraphConv weights.
    feat   : (n_src, in_f) source node features; c_src (n_src,1), c_dst (n_dst,1).
    fc_w   : (out_units, R*msg_per) torch nn.Linear weight; fc_b (out_units,).
    transpose_a=False -> dst = A rows (users); True -> dst = A cols (items).
    """
    R, in_f, msg_per = W.shape
    msg_units = R * msg_per
    out_units = fc_w.shape[0]
    assert feat.shape[1] == in_f

    if transpose_a:
        n_src, n_dst = A.shape[1], A.shape[2]
    else:
        n_dst, n_src = A.shape[1], A.shape[2]

    td = _pick_tile(n_dst, tile_dst)
    ts = _pick_tile(n_src, tile_src)
    assert n_dst % td == 0 and n_src % ts == 0, "pad graph to tile size"

    if transpose_a:
        a_block = (R, ts, td)
        a_index = lambda d, s: (0, s, d)
    else:
        a_block = (R, td, ts)
        a_index = lambda d, s: (0, d, s)

    # Concatenate per-rating weights along the output axis: columns are r-major,
    # matching the stack(.view(n, -1)) layout the Linear expects.
    w_all = jnp.transpose(W, (1, 0, 2)).reshape(in_f, msg_units)
    fc_wt = fc_w.T                                   # (msg_units, out_units)
    fc_b2 = fc_b.reshape(1, out_units)

    # Stage 1: per-source messages for all ratings (computed exactly once).
    H = _project_messages(feat, w_all, c_src, tile_src=tile_src)

    # Stage 2: adjacency aggregation + fused Linear.
    kernel = functools.partial(_gcmc_agg_kernel, num_ratings=R,
                               msg_per=msg_per, transpose_a=transpose_a)

    return pl.pallas_call(
        kernel,
        out_shape=jax.ShapeDtypeStruct((n_dst, out_units), jnp.float32),
        grid_spec=pltpu.PrefetchScalarGridSpec(
            num_scalar_prefetch=0,
            grid=(n_dst // td, n_src // ts),
            in_specs=[
                pl.BlockSpec(a_block, a_index),
                pl.BlockSpec((ts, msg_units), lambda d, s: (s, 0)),
                pl.BlockSpec((td, 1), lambda d, s: (d, 0)),
                pl.BlockSpec((msg_units, out_units), lambda d, s: (0, 0)),
                pl.BlockSpec((1, out_units), lambda d, s: (0, 0)),
            ],
            out_specs=pl.BlockSpec((td, out_units), lambda d, s: (d, 0)),
            scratch_shapes=[pltpu.VMEM((td, msg_units), jnp.float32)],
        ),
        compiler_params=pltpu.CompilerParams(
            dimension_semantics=("parallel", "arbitrary"),
            vmem_limit_bytes=32 * 1024 * 1024,
        ),
    )(A, H, c_dst, fc_wt, fc_b2)


# ---------------------------------------------------------------------------
# GCMCLayer forward: two directions, each streaming A exactly once.
# ---------------------------------------------------------------------------
def gcmc_layer_forward(params, graph, tile_dst=256, tile_src=512):
    A = graph["A"]  # (R, n_user, n_item)
    # item -> user (dst = user = A rows), uses W_rev + ufc
    new_u = gcmc_direction(A, params["W_rev"], graph["ifeat"],
                           graph["c_item"], graph["c_user"],
                           params["ufc_w"], params["ufc_b"],
                           transpose_a=False, tile_dst=tile_dst, tile_src=tile_src)
    # user -> item (dst = item = A cols), uses W_fwd + ifc; A read in-place (no A^T)
    new_i = gcmc_direction(A, params["W_fwd"], graph["ufeat"],
                           graph["c_user"], graph["c_item"],
                           params["ifc_w"], params["ifc_b"],
                           transpose_a=True, tile_dst=tile_dst, tile_src=tile_src)
    return new_u, new_i


# pure-JAX reference for verification
def gcmc_layer_reference(params, graph):
    A = graph["A"].astype(jnp.float32)
    c_user, c_item = graph["c_user"], graph["c_item"]
    ufeat, ifeat = graph["ufeat"], graph["ifeat"]

    def msg(A_rds, W, feat, c_src, c_dst):
        h = jnp.einsum("sf,rfm->rsm", feat, W) * c_src[None]
        return jnp.einsum("rds,rsm->rdm", A_rds, h) * c_dst[None]

    z_u = msg(A, params["W_rev"], ifeat, c_item, c_user)
    z_i = msg(jnp.transpose(A, (0, 2, 1)), params["W_fwd"], ufeat, c_user, c_item)
    z_u = jnp.transpose(z_u, (1, 0, 2)).reshape(ufeat.shape[0], -1)
    z_i = jnp.transpose(z_i, (1, 0, 2)).reshape(ifeat.shape[0], -1)
    nu = z_u @ params["ufc_w"].T + params["ufc_b"]
    ni = z_i @ params["ifc_w"].T + params["ifc_b"]
    return nu, ni


if __name__ == "__main__":
    # ---- small, module-consistent shapes (multiples of the 128 tile) ----
    rating_vals = [1, 2, 3]
    R = len(rating_vals)
    user_in_units = 64
    item_in_units = 96
    msg_per = 8                    # agg="stack": per-rating msg size
    msg_units = R * msg_per        # 24
    out_units = 16
    n_user, n_item = 256, 384

    key = jax.random.PRNGKey(0)
    ks = jax.random.split(key, 8)

    def xavier(k, shape):
        fan_in, fan_out = shape[-2], shape[-1]
        lim = (6.0 / (fan_in + fan_out)) ** 0.5
        return jax.random.uniform(k, shape, jnp.float32, -lim, lim)

    params = {
        "W_fwd": xavier(ks[0], (R, user_in_units, msg_per)),   # conv for rating r
        "W_rev": xavier(ks[1], (R, item_in_units, msg_per)),   # conv for rev-rating r
        "ufc_w": xavier(ks[2], (out_units, msg_units)),
        "ufc_b": jnp.zeros((out_units,), jnp.float32),
        "ifc_w": xavier(ks[3], (out_units, msg_units)),
        "ifc_b": jnp.zeros((out_units,), jnp.float32),
    }

    # deterministic synthetic bipartite rating graph (dense per-rating adjacency)
    A01 = (jax.random.uniform(ks[4], (R, n_user, n_item)) < 0.15).astype(jnp.float32)
    deg_user = jnp.maximum(A01.sum(axis=(0, 2)), 1.0)
    deg_item = jnp.maximum(A01.sum(axis=(0, 1)), 1.0)
    graph = {
        "A": A01.astype(jnp.bfloat16),   # 0/1 values are exact in bf16; halves HBM traffic
        "c_user": (1.0 / jnp.sqrt(deg_user)).reshape(n_user, 1),
        "c_item": (1.0 / jnp.sqrt(deg_item)).reshape(n_item, 1),
        "ufeat": jax.random.normal(ks[5], (n_user, user_in_units), jnp.float32),
        "ifeat": jax.random.normal(ks[6], (n_item, item_in_units), jnp.float32),
    }

    new_ufeat, new_ifeat = gcmc_layer_forward(params, graph)
    jax.block_until_ready((new_ufeat, new_ifeat))

    ref_u, ref_i = gcmc_layer_reference(params, graph)
    assert new_ufeat.shape == (n_user, out_units)
    assert new_ifeat.shape == (n_item, out_units)
    assert jnp.allclose(new_ufeat, ref_u, atol=5e-3, rtol=5e-3)
    assert jnp.allclose(new_ifeat, ref_i, atol=5e-3, rtol=5e-3)

    print("KERNEL_OK")
</pallas_src>

<mosaic_0001>
module attributes {stable_mosaic.version = 11 : i64} {
  func.func @_gcmc_proj_kernel(%arg0: i32, %arg1: memref<384x96xf32, #tpu.memory_space<vmem>>, %arg2: memref<96x24xf32, #tpu.memory_space<vmem>>, %arg3: memref<384x1xf32, #tpu.memory_space<vmem>>, %arg4: memref<384x24xf32, #tpu.memory_space<vmem>>) attributes {dimension_semantics = [#tpu.dimension_semantics<parallel>], iteration_bounds = array<i64: 1>, scalar_prefetch = 0 : i64, scratch_operands = 0 : i64, tpu.core_type = #tpu.core_type<tc>, window_params = [{transform_indices = @transform_0, window_bounds = array<i64: 384, 96>}, {pipeline_mode = #tpu.pipeline_mode<synchronous>, transform_indices = @transform_1, window_bounds = array<i64: 96, 24>}, {transform_indices = @transform_2, window_bounds = array<i64: 384, 1>}, {transform_indices = @transform_3, window_bounds = array<i64: 384, 24>}]} {
    %c0 = arith.constant 0 : index
    %c0_0 = arith.constant 0 : index
    %0 = vector.load %arg1[%c0, %c0_0] : memref<384x96xf32, #tpu.memory_space<vmem>>, vector<384x96xf32>
    %c0_1 = arith.constant 0 : index
    %c0_2 = arith.constant 0 : index
    %1 = vector.load %arg2[%c0_1, %c0_2] : memref<96x24xf32, #tpu.memory_space<vmem>>, vector<96x24xf32>
    %cst = arith.constant dense<0.000000e+00> : vector<384x24xf32>
    %2 = tpu.matmul %0, %1, %cst {dimension_numbers = #tpu.dot_dimension_numbers<[1], [0], [0], [1], [0, 0, 1, 1], [], []>} : vector<384x96xf32>, vector<96x24xf32>, vector<384x24xf32> -> vector<384x24xf32>
    %c0_3 = arith.constant 0 : index
    %c0_4 = arith.constant 0 : index
    %3 = vector.load %arg3[%c0_3, %c0_4] : memref<384x1xf32, #tpu.memory_space<vmem>>, vector<384x1xf32>
    %4 = vector.broadcast %3 : vector<384x1xf32> to vector<384x24xf32>
    %5 = arith.mulf %2, %4 : vector<384x24xf32>
    %c0_5 = arith.constant 0 : index
    %c0_6 = arith.constant 0 : index
    %6 = vector.load %arg4[%c0_5, %c0_6] : memref<384x24xf32, #tpu.memory_space<vmem>>, vector<384x24xf32>
    tpu.vector_store %arg4[%c0_5, %c0_6], %5 {strides = array<i32>} : memref<384x24xf32, #tpu.memory_space<vmem>>, vector<384x24xf32>,
    return
  }
  func.func @transform_0(%arg0: i32) -> (i32, i32) {
    %c0_i32 = arith.constant 0 : i32
    %c0_i32_0 = arith.constant 0 : i32
    return %arg0, %c0_i32 : i32, i32
  }
  func.func @transform_1(%arg0: i32) -> (i32, i32) {
    %c0_i32 = arith.constant 0 : i32
    %c0_i32_0 = arith.constant 0 : i32
    %c0_i32_1 = arith.constant 0 : i32
    return %c0_i32, %c0_i32_0 : i32, i32
  }
  func.func @transform_2(%arg0: i32) -> (i32, i32) {
    %c0_i32 = arith.constant 0 : i32
    %c0_i32_0 = arith.constant 0 : i32
    return %arg0, %c0_i32 : i32, i32
  }
  func.func @transform_3(%arg0: i32) -> (i32, i32) {
    %c0_i32 = arith.constant 0 : i32
    %c0_i32_0 = arith.constant 0 : i32
    return %arg0, %c0_i32 : i32, i32
  }
}

</mosaic_0001>

<bundles_post_ra>
// kernel: tpu_custom_call.1
= control target key start
LH: loop header
LB: loop body
LE: loop exit
PB: predicated region body
PF: predicated region fallthrough
CT: control target
= control target key end

     0   :  { %v1156_v0 = vmov 0   ;;  %vm74_vm0 = vcmask 785408   ;;  %vm860_vm1 = vcmask 195584   ;;  %s1816_s2 = inlined_call_operand.vmem [shape: f32[384,1], index: 2, kind: input, shape index: {}]   ;;  %s1817_s1 = inlined_call_operand.vmem [shape: f32[96,24], index: 1, kind: input, shape index: {}]   ;;  %s1818_s0 = inlined_call_operand.vmem [shape: f32[384,96], index: 0, kind: input, shape index: {}]   ;;  %s1819_s3 = inlined_call_operand.vmem [shape: f32[384,24], index: 3, kind: output, shape index: {}]  }
   0x1   :  { %1155 = vset.pattern.permute.xlu1 %v1156_v0  ;;  %1154 = vset.pattern.permute.xlu0 %v1156_v0  ;;  %v526_v1 = vld [vmem:[%s1816_s2 + $0x10] sm:$0xff]  ;;  %v524_v2 = vld [vmem:[%s1816_s2] sm:$0xff]  ;;  %v63_v4 = vld [vmem:[%s1817_s1 + $0x8] sm:$0xff] }
   0x2   :  { %v62_v3 = vld [vmem:[%s1817_s1] sm:$0xff]  ;;  %584 = vperm.xlu1 %1155, %v526_v1   ;;  %574 = vperm.xlu0 %1154, %v524_v2   ;;  %v64_v6 = vld [vmem:[%s1817_s1 + $0x10] sm:$0xff]  ;;  %v65_v7 = vld [vmem:[%s1817_s1 + $0x18] sm:$0xff] }
   0x3   :  { %v1117_v5 = vpack.c.bf16 %v63_v4, %v62_v3  ;;  %v527_v8 = vld [vmem:[%s1816_s2 + $0x18] sm:$0xff]  ;;  %v525_v9 = vld [vmem:[%s1816_s2 + $0x8] sm:$0xff]  ;;  %v1121_v10 = vpack.c.bf16 %v65_v7, %v64_v6  ;;  %v66_v11 = vld [vmem:[%s1817_s1 + $0x20] sm:$0xff] }
   0x4   :  { %v67_v12 = vld [vmem:[%s1817_s1 + $0x28] sm:$0xff]  ;;  %v528_v14 = vld [vmem:[%s1816_s2 + $0x20] sm:$0xff]  ;;  %v68_v16 = vld [vmem:[%s1817_s1 + $0x30] sm:$0xff] }
   0x5   :  { %1118 = vmatprep.subr.bf16.mxu0 %v1117_v5  ;;  %1141 = vmatprep.subr.bf16.mxu1 %v1117_v5  ;;  %v529_v13 = vld [vmem:[%s1816_s2 + $0x28] sm:$0xff]  ;;  %v1125_v15 = vpack.c.bf16 %v67_v12, %v66_v11  ;;  %v69_v17 = vld [vmem:[%s1817_s1 + $0x38] sm:$0xff]  ;;  %v14_v18 = vld [vmem:[%s1818_s0] sm:$0xff] }
   0x6   :  { %1120 = vmatpush3.bf16.msra.mxu0 %v1117_v5  ;;  %1147 = vmatpush3.bf16.msra.mxu1 %v1117_v5  ;;  %v38_v19 = vld [vmem:[%s1818_s0 + $0xc0] sm:$0xff]  ;;  %v531_v20 = vld [vmem:[%s1816_s2 + $0x38] sm:$0xff]  ;;  %v530_v21 = vld [vmem:[%s1816_s2 + $0x30] sm:$0xff]  ;;  %v1129_v22 = vpack.c.bf16 %v69_v17, %v68_v16 }
   0x7   :  { %589 = vperm.xlu1 %1155, %v527_v8   ;;  %579 = vperm.xlu0 %1154, %v525_v9   ;;  %v70_v23 = vld [vmem:[%s1817_s1 + $0x40] sm:$0xff]  ;;  %v71_v24 = vld [vmem:[%s1817_s1 + $0x48] sm:$0xff]  ;;  %v72_v28 = vld [vmem:[%s1817_s1 + $0x50] sm:$0xff] }
   0x8   :  { %1122 = vmatprep.subr.bf16.mxu0 %v1121_v10  ;;  %1142 = vmatprep.subr.bf16.mxu1 %v1121_v10  ;;  %v533_v25 = vld [vmem:[%s1816_s2 + $0x48] sm:$0xff]  ;;  %v532_v26 = vld [vmem:[%s1816_s2 + $0x40] sm:$0xff]  ;;  %v1133_v27 = vpack.c.bf16 %v71_v24, %v70_v23  ;;  %v73_v29 = vld [vmem:[%s1817_s1 + $0x58] sm:$0xff] }
   0x9   :  { %1045 = vmatprep.mubr.msk.f32.mxu0 %vm74_vm0, %v14_v18  ;;  %1081 = vmatprep.mubr.msk.f32.mxu1 %vm74_vm0, %v38_v19  ;;  %v535_v30 = vld [vmem:[%s1816_s2 + $0x58] sm:$0xff]  ;;  %v534_v31 = vld [vmem:[%s1816_s2 + $0x50] sm:$0xff]  ;;  %v1137_v32 = vpack.c.bf16 %v73_v29, %v72_v28  ;;  %v537_v33 = vld [vmem:[%s1816_s2 + $0x68] sm:$0xff] }
   0xa   :  { %1124 = vmatpush3.bf16.msra.mxu0 %v1121_v10  ;;  %1148 = vmatpush3.bf16.msra.mxu1 %v1121_v10  ;;  %v536_v34 = vld [vmem:[%s1816_s2 + $0x60] sm:$0xff]  ;;  %v15_v35 = vld [vmem:[%s1818_s0 + $0x8] sm:$0xff]  ;;  %v16_v37 = vld [vmem:[%s1818_s0 + $0x10] sm:$0xff] }
   0xb   :  { %599 = vperm.xlu1 %1155, %v529_v13   ;;  %594 = vperm.xlu0 %1154, %v528_v14   ;;  %v39_v36 = vld [vmem:[%s1818_s0 + $0xc8] sm:$0xff]  ;;  %v40_v38 = vld [vmem:[%s1818_s0 + $0xd0] sm:$0xff]  ;;  %v539_v39 = vld [vmem:[%s1816_s2 + $0x78] sm:$0xff] }
   0xc   :  { %1126 = vmatprep.subr.bf16.mxu0 %v1125_v15  ;;  %1143 = vmatprep.subr.bf16.mxu1 %v1125_v15  ;;  %v538_v40 = vld [vmem:[%s1816_s2 + $0x70] sm:$0xff]  ;;  %v17_v41 = vld [vmem:[%s1818_s0 + $0x18] sm:$0xff]  ;;  %v18_v43 = vld [vmem:[%s1818_s0 + $0x20] sm:$0xff] }
   0xd   :  { %v41_v42 = vld [vmem:[%s1818_s0 + $0xd8] sm:$0xff]  ;;  %v42_v44 = vld [vmem:[%s1818_s0 + $0xe0] sm:$0xff]  ;;  %v541_v45 = vld [vmem:[%s1816_s2 + $0x88] sm:$0xff] }
   0xe   :  { %1128 = vmatpush3.bf16.msra.mxu0 %v1125_v15  ;;  %1149 = vmatpush3.bf16.msra.mxu1 %v1125_v15  ;;  %v540_v46 = vld [vmem:[%s1816_s2 + $0x80] sm:$0xff]  ;;  %v19_v47 = vld [vmem:[%s1818_s0 + $0x28] sm:$0xff]  ;;  %v20_v49 = vld [vmem:[%s1818_s0 + $0x30] sm:$0xff] }
   0xf   :  { %609 = vperm.xlu1 %1155, %v531_v20   ;;  %604 = vperm.xlu0 %1154, %v530_v21   ;;  %v43_v48 = vld [vmem:[%s1818_s0 + $0xe8] sm:$0xff]  ;;  %v44_v50 = vld [vmem:[%s1818_s0 + $0xf0] sm:$0xff]  ;;  %v543_v51 = vld [vmem:[%s1816_s2 + $0x98] sm:$0xff] }
  0x10   :  { %1130 = vmatprep.subr.bf16.mxu0 %v1129_v22  ;;  %1144 = vmatprep.subr.bf16.mxu1 %v1129_v22  ;;  %v542_v52 = vld [vmem:[%s1816_s2 + $0x90] sm:$0xff]  ;;  %v21_v53 = vld [vmem:[%s1818_s0 + $0x38] sm:$0xff]  ;;  %v22_v55 = vld [vmem:[%s1818_s0 + $0x40] sm:$0xff] }
  0x11   :  { %v45_v54 = vld [vmem:[%s1818_s0 + $0xf8] sm:$0xff]  ;;  %v46_v56 = vld [vmem:[%s1818_s0 + $0x100] sm:$0xff]  ;;  %v545_v57 = vld [vmem:[%s1816_s2 + $0xa8] sm:$0xff] }
  0x12   :  { %1132 = vmatpush3.bf16.msra.mxu0 %v1129_v22  ;;  %1150 = vmatpush3.bf16.msra.mxu1 %v1129_v22  ;;  %v544_v58 = vld [vmem:[%s1816_s2 + $0xa0] sm:$0xff]  ;;  %v23_v59 = vld [vmem:[%s1818_s0 + $0x48] sm:$0xff]  ;;  %v24_v61 = vld [vmem:[%s1818_s0 + $0x50] sm:$0xff] }
  0x13   :  { %619 = vperm.xlu1 %1155, %v533_v25   ;;  %614 = vperm.xlu0 %1154, %v532_v26   ;;  %v47_v60 = vld [vmem:[%s1818_s0 + $0x108] sm:$0xff]  ;;  %v48_v62 = vld [vmem:[%s1818_s0 + $0x110] sm:$0xff]  ;;  %v547_v63 = vld [vmem:[%s1816_s2 + $0xb8] sm:$0xff] }
  0x14   :  { %1134 = vmatprep.subr.bf16.mxu0 %v1133_v27  ;;  %1145 = vmatprep.subr.bf16.mxu1 %v1133_v27  ;;  %v546_v0 = vld [vmem:[%s1816_s2 + $0xb0] sm:$0xff]  ;;  %v25_v1 = vld [vmem:[%s1818_s0 + $0x58] sm:$0xff]  ;;  %v26_v3 = vld [vmem:[%s1818_s0 + $0x60] sm:$0xff] }
  0x15   :  { %v49_v2 = vld [vmem:[%s1818_s0 + $0x118] sm:$0xff]  ;;  %v50_v4 = vld [vmem:[%s1818_s0 + $0x120] sm:$0xff]  ;;  %v549_v5 = vld [vmem:[%s1816_s2 + $0xc8] sm:$0xff] }
  0x16   :  { %1136 = vmatpush3.bf16.msra.mxu0 %v1133_v27  ;;  %1151 = vmatpush3.bf16.msra.mxu1 %v1133_v27  ;;  %v548_v6 = vld [vmem:[%s1816_s2 + $0xc0] sm:$0xff]  ;;  %v27_v7 = vld [vmem:[%s1818_s0 + $0x68] sm:$0xff]  ;;  %v28_v9 = vld [vmem:[%s1818_s0 + $0x70] sm:$0xff] }
  0x17   :  { %629 = vperm.xlu1 %1155, %v535_v30   ;;  %624 = vperm.xlu0 %1154, %v534_v31   ;;  %v51_v8 = vld [vmem:[%s1818_s0 + $0x128] sm:$0xff]  ;;  %v52_v10 = vld [vmem:[%s1818_s0 + $0x130] sm:$0xff]  ;;  %v551_v11 = vld [vmem:[%s1816_s2 + $0xd8] sm:$0xff] }
  0x18   :  { %1138 = vmatprep.subr.bf16.mxu0 %v1137_v32  ;;  %1146 = vmatprep.subr.bf16.mxu1 %v1137_v32  ;;  %v550_v12 = vld [vmem:[%s1816_s2 + $0xd0] sm:$0xff]  ;;  %v29_v13 = vld [vmem:[%s1818_s0 + $0x78] sm:$0xff]  ;;  %v30_v15 = vld [vmem:[%s1818_s0 + $0x80] sm:$0xff] }
  0x19   :  { %v53_v14 = vld [vmem:[%s1818_s0 + $0x138] sm:$0xff]  ;;  %v54_v16 = vld [vmem:[%s1818_s0 + $0x140] sm:$0xff]  ;;  %v553_v17 = vld [vmem:[%s1816_s2 + $0xe8] sm:$0xff] }
  0x1a   :  { %1140 = vmatpush3.bf16.msra.mxu0 %v1137_v32  ;;  %1152 = vmatpush3.bf16.msra.mxu1 %v1137_v32  ;;  %v552_v18 = vld [vmem:[%s1816_s2 + $0xe0] sm:$0xff]  ;;  %v31_v19 = vld [vmem:[%s1818_s0 + $0x88] sm:$0xff]  ;;  %v32_v21 = vld [vmem:[%s1818_s0 + $0x90] sm:$0xff] }
  0x1b   :  { %639 = vperm.xlu1 %1155, %v537_v33   ;;  %634 = vperm.xlu0 %1154, %v536_v34   ;;  %v55_v20 = vld [vmem:[%s1818_s0 + $0x148] sm:$0xff]  ;;  %v56_v22 = vld [vmem:[%s1818_s0 + $0x150] sm:$0xff]  ;;  %v555_v23 = vld [vmem:[%s1816_s2 + $0xf8] sm:$0xff] }
  0x1c   :  { %v554_v24 = vld [vmem:[%s1816_s2 + $0xf0] sm:$0xff]  ;;  %v33_v25 = vld [vmem:[%s1818_s0 + $0x98] sm:$0xff]  ;;  %v34_v27 = vld [vmem:[%s1818_s0 + $0xa0] sm:$0xff] }
  0x1d   :  { %1046 = vmatmul.mubr.msk.f32.vlgmr.msra.gmra.mrb[0].mxu0 %vm74_vm0, %v15_v35  ;;  %1082 = vmatmul.mubr.msk.f32.vlgmr.msra.gmra.mrb[0].mxu1 %vm74_vm0, %v39_v36  ;;  %v57_v26 = vld [vmem:[%s1818_s0 + $0x158] sm:$0xff]  ;;  %v58_v28 = vld [vmem:[%s1818_s0 + $0x160] sm:$0xff]  ;;  %v557_v29 = vld [vmem:[%s1816_s2 + $0x108] sm:$0xff] }
  0x1e   :  { %1048 = vmatprep.mubr.msk.f32.mxu0 %vm74_vm0, %v16_v37  ;;  %1084 = vmatprep.mubr.msk.f32.mxu1 %vm74_vm0, %v40_v38  ;;  %v556_v30 = vld [vmem:[%s1816_s2 + $0x100] sm:$0xff]  ;;  %v35_v31 = vld [vmem:[%s1818_s0 + $0xa8] sm:$0xff]  ;;  %v36_v33 = vld [vmem:[%s1818_s0 + $0xb0] sm:$0xff] }
  0x1f   :  { %649 = vperm.xlu1 %1155, %v539_v39   ;;  %644 = vperm.xlu0 %1154, %v538_v40   ;;  %v59_v32 = vld [vmem:[%s1818_s0 + $0x168] sm:$0xff]  ;;  %v60_v34 = vld [vmem:[%s1818_s0 + $0x170] sm:$0xff]  ;;  %v559_v35 = vld [vmem:[%s1816_s2 + $0x118] sm:$0xff] }
  0x20   :  { %v558_v36 = vld [vmem:[%s1816_s2 + $0x110] sm:$0xff]  ;;  %v37_v37 = vld [vmem:[%s1818_s0 + $0xb8] sm:$0xff]  ;;  %v561_v39 = vld [vmem:[%s1816_s2 + $0x128] sm:$0xff] }
  0x21   :  { %1049 = vmatmul.mubr.msk.f32.gmra.mrb[2].mxu0 %vm74_vm0, %v17_v41  ;;  %1085 = vmatmul.mubr.msk.f32.gmra.mrb[2].mxu1 %vm74_vm0, %v41_v42  ;;  %v61_v38 = vld [vmem:[%s1818_s0 + $0x178] sm:$0xff]  ;;  %v560_v40 = vld [vmem:[%s1816_s2 + $0x120] sm:$0xff]  ;;  %v562_v42 = vld [vmem:[%s1816_s2 + $0x130] sm:$0xff] }
  0x22   :  { %1051 = vmatprep.mubr.msk.f32.mxu0 %vm74_vm0, %v18_v43  ;;  %1087 = vmatprep.mubr.msk.f32.mxu1 %vm74_vm0, %v42_v44  ;;  %v563_v41 = vld [vmem:[%s1816_s2 + $0x138] sm:$0xff]  ;;  %v565_v43 = vld [vmem:[%s1816_s2 + $0x148] sm:$0xff]  ;;  %v564_v44 = vld [vmem:[%s1816_s2 + $0x140] sm:$0xff] }
  0x23   :  { %659 = vperm.xlu1 %1155, %v541_v45   ;;  %654 = vperm.xlu0 %1154, %v540_v46   ;;  %v567_v45 = vld [vmem:[%s1816_s2 + $0x158] sm:$0xff]  ;;  %v566_v46 = vld [vmem:[%s1816_s2 + $0x150] sm:$0xff] }
  0x25   :  { %1052 = vmatmul.mubr.msk.f32.gmra.mrb[4].mxu0 %vm74_vm0, %v19_v47  ;;  %1088 = vmatmul.mubr.msk.f32.gmra.mrb[4].mxu1 %vm74_vm0, %v43_v48  ;;  %v569_v47 = vld [vmem:[%s1816_s2 + $0x168] sm:$0xff]  ;;  %v568_v48 = vld [vmem:[%s1816_s2 + $0x160] sm:$0xff] }
  0x26   :  { %1054 = vmatprep.mubr.msk.f32.mxu0 %vm74_vm0, %v20_v49  ;;  %1090 = vmatprep.mubr.msk.f32.mxu1 %vm74_vm0, %v44_v50  ;;  %v571_v49 = vld [vmem:[%s1816_s2 + $0x178] sm:$0xff]  ;;  %v570_v50 = vld [vmem:[%s1816_s2 + $0x170] sm:$0xff] }
  0x27   :  { %669 = vperm.xlu1 %1155, %v543_v51   ;;  %664 = vperm.xlu0 %1154, %v542_v52  }
  0x29   :  { %1055 = vmatmul.mubr.msk.f32.gmra.mrb[6].mxu0 %vm74_vm0, %v21_v53  ;;  %1091 = vmatmul.mubr.msk.f32.gmra.mrb[6].mxu1 %vm74_vm0, %v45_v54 }
  0x2a   :  { %1057 = vmatprep.mubr.msk.f32.mxu0 %vm74_vm0, %v22_v55  ;;  %1093 = vmatprep.mubr.msk.f32.mxu1 %vm74_vm0, %v46_v56 }
  0x2b   :  { %679 = vperm.xlu1 %1155, %v545_v57   ;;  %674 = vperm.xlu0 %1154, %v544_v58  }
  0x2d   :  { %1058 = vmatmul.mubr.msk.f32.gmra.mrb[8].mxu0 %vm74_vm0, %v23_v59  ;;  %1094 = vmatmul.mubr.msk.f32.gmra.mrb[8].mxu1 %vm74_vm0, %v47_v60 }
  0x2e   :  { %1060 = vmatprep.mubr.msk.f32.mxu0 %vm74_vm0, %v24_v61  ;;  %1096 = vmatprep.mubr.msk.f32.mxu1 %vm74_vm0, %v48_v62 }
  0x2f   :  { %689 = vperm.xlu1 %1155, %v547_v63   ;;  %684 = vperm.xlu0 %1154, %v546_v0  }
  0x31   :  { %1061 = vmatmul.mubr.msk.f32.gmra.mrb[10].mxu0 %vm74_vm0, %v25_v1  ;;  %1097 = vmatmul.mubr.msk.f32.gmra.mrb[10].mxu1 %vm74_vm0, %v49_v2 }
  0x32   :  { %1063 = vmatprep.mubr.msk.f32.mxu0 %vm74_vm0, %v26_v3  ;;  %1099 = vmatprep.mubr.msk.f32.mxu1 %vm74_vm0, %v50_v4 }
  0x33   :  { %699 = vperm.xlu1 %1155, %v549_v5   ;;  %694 = vperm.xlu0 %1154, %v548_v6  }
  0x35   :  { %1064 = vmatmul.mubr.msk.f32.gmra.mrb[12].mxu0 %vm74_vm0, %v27_v7  ;;  %1100 = vmatmul.mubr.msk.f32.gmra.mrb[12].mxu1 %vm74_vm0, %v51_v8 }
  0x36   :  { %1066 = vmatprep.mubr.msk.f32.mxu0 %vm74_vm0, %v28_v9  ;;  %1102 = vmatprep.mubr.msk.f32.mxu1 %vm74_vm0, %v52_v10 }
  0x37   :  { %709 = vperm.xlu1 %1155, %v551_v11   ;;  %704 = vperm.xlu0 %1154, %v550_v12  }
  0x39   :  { %1067 = vmatmul.mubr.msk.f32.gmra.mrb[14].mxu0 %vm74_vm0, %v29_v13  ;;  %1103 = vmatmul.mubr.msk.f32.gmra.mrb[14].mxu1 %vm74_vm0, %v53_v14 }
  0x3a   :  { %1069 = vmatprep.mubr.msk.f32.mxu0 %vm74_vm0, %v30_v15  ;;  %1105 = vmatprep.mubr.msk.f32.mxu1 %vm74_vm0, %v54_v16 }
  0x3b   :  { %719 = vperm.xlu1 %1155, %v553_v17   ;;  %714 = vperm.xlu0 %1154, %v552_v18  }
  0x3d   :  { %1070 = vmatmul.mubr.msk.f32.gmra.mrb[16].mxu0 %vm74_vm0, %v31_v19  ;;  %1106 = vmatmul.mubr.msk.f32.gmra.mrb[16].mxu1 %vm74_vm0, %v55_v20 }
  0x3e   :  { %1072 = vmatprep.mubr.msk.f32.mxu0 %vm74_vm0, %v32_v21  ;;  %1108 = vmatprep.mubr.msk.f32.mxu1 %vm74_vm0, %v56_v22 }
  0x3f   :  { %729 = vperm.xlu1 %1155, %v555_v23   ;;  %724 = vperm.xlu0 %1154, %v554_v24  }
  0x41   :  { %1073 = vmatmul.mubr.msk.f32.gmra.mrb[18].mxu0 %vm74_vm0, %v33_v25  ;;  %1109 = vmatmul.mubr.msk.f32.gmra.mrb[18].mxu1 %vm74_vm0, %v57_v26 }
  0x42   :  { %1075 = vmatprep.mubr.msk.f32.mxu0 %vm74_vm0, %v34_v27  ;;  %1111 = vmatprep.mubr.msk.f32.mxu1 %vm74_vm0, %v58_v28 }
  0x43   :  { %739 = vperm.xlu1 %1155, %v557_v29   ;;  %734 = vperm.xlu0 %1154, %v556_v30  }
  0x45   :  { %1076 = vmatmul.mubr.msk.f32.gmra.mrb[20].mxu0 %vm74_vm0, %v35_v31  ;;  %1112 = vmatmul.mubr.msk.f32.gmra.mrb[20].mxu1 %vm74_vm0, %v59_v32 }
  0x46   :  { %1078 = vmatprep.mubr.msk.f32.mxu0 %vm74_vm0, %v36_v33  ;;  %1114 = vmatprep.mubr.msk.f32.mxu1 %vm74_vm0, %v60_v34 }
  0x47   :  { %749 = vperm.xlu1 %1155, %v559_v35   ;;  %744 = vperm.xlu0 %1154, %v558_v36  }
  0x49   :  { %1079 = vmatmul.mubr.msk.f32.gmra.mrb[22].mxu0 %vm74_vm0, %v37_v37  ;;  %1115 = vmatmul.mubr.msk.f32.gmra.mrb[22].mxu1 %vm74_vm0, %v61_v38 }
  0x4b   :  { %759 = vperm.xlu1 %1155, %v561_v39   ;;  %754 = vperm.xlu0 %1154, %v560_v40  }
  0x4f   :  { %769 = vperm.xlu1 %1155, %v563_v41   ;;  %764 = vperm.xlu0 %1154, %v562_v42  }
  0x53   :  { %779 = vperm.xlu1 %1155, %v565_v43   ;;  %774 = vperm.xlu0 %1154, %v564_v44  }
  0x57   :  { %789 = vperm.xlu1 %1155, %v567_v45   ;;  %784 = vperm.xlu0 %1154, %v566_v46  }
  0x5b   :  { %799 = vperm.xlu1 %1155, %v569_v47   ;;  %794 = vperm.xlu0 %1154, %v568_v48  }
  0x5f   :  { %809 = vperm.xlu1 %1155, %v571_v49   ;;  %804 = vperm.xlu0 %1154, %v570_v50  }
  0x81   :  { %v585_v51 = vpop.permute.xlu1 %584  ;;  %v575_v52 = vpop.permute.xlu0 %574 }
  0x86   :  { %v590_v53 = vpop.permute.xlu1 %589  ;;  %v580_v54 = vpop.permute.xlu0 %579 }
  0x8a   :  { %v600_v55 = vpop.permute.xlu1 %599  ;;  %v1549_v56 = vpop.permute.xlu0 %594 }
  0x8e   :  { %v1551_v57 = vpop.permute.xlu1 %609  ;;  %v1553_v58 = vpop.permute.xlu0 %604 }
  0x92   :  { %v1555_v59 = vpop.permute.xlu1 %619  ;;  %v1557_v60 = vpop.permute.xlu0 %614 }
  0x96   :  { %v1559_v61 = vpop.permute.xlu1 %629  ;;  %v1561_v62 = vpop.permute.xlu0 %624 }
  0x9a   :  { %v1563_v63 = vpop.permute.xlu1 %639  ;;  %v1565_v0 = vpop.permute.xlu0 %634 }
  0x9e   :  { %v1567_v1 = vpop.permute.xlu1 %649  ;;  %v1569_v2 = vpop.permute.xlu0 %644 }
  0xa2   :  { %v1571_v3 = vpop.permute.xlu1 %659  ;;  %v1573_v4 = vpop.permute.xlu0 %654 }
  0xa6   :  { %v1575_v5 = vpop.permute.xlu1 %669  ;;  %v1577_v6 = vpop.permute.xlu0 %664 }
  0xaa   :  { %v1579_v7 = vpop.permute.xlu1 %679  ;;  %v1581_v8 = vpop.permute.xlu0 %674 }
  0xae   :  { %v1583_v9 = vpop.permute.xlu1 %689  ;;  %v1585_v10 = vpop.permute.xlu0 %684 }
  0xb2   :  { %v700_v11 = vpop.permute.xlu1 %699  ;;  %v695_v12 = vpop.permute.xlu0 %694 }
  0xb6   :  { %v710_v13 = vpop.permute.xlu1 %709  ;;  %v705_v14 = vpop.permute.xlu0 %704 }
  0xba   :  { %v720_v15 = vpop.permute.xlu1 %719  ;;  %v715_v16 = vpop.permute.xlu0 %714 }
  0xbe   :  { %v730_v17 = vpop.permute.xlu1 %729  ;;  %v725_v18 = vpop.permute.xlu0 %724 }
  0xc2   :  { %v740_v19 = vpop.permute.xlu1 %739  ;;  %v1587_v20 = vpop.permute.xlu0 %734 }
  0xc6   :  { %v1589_v21 = vpop.permute.xlu1 %749  ;;  %v1591_v22 = vpop.permute.xlu0 %744 }
  0xca   :  { %v1593_v31 = vpop.permute.xlu1 %759  ;;  %v1595_v32 = vpop.permute.xlu0 %754 }
  0xce   :  { %v770_v49 = vpop.permute.xlu1 %769  ;;  %v1630_v50 = vpop.permute.xlu0 %764 }
  0xf0   :  { %v1047_v23 = vpop.f32.mrb[0].mxu0  ;;  %v1083_v24 = vpop.f32.mrb[0].mxu1 }
  0xf1   :  { %v813_v25 = vmul.f32 %v1047_v23, %v580_v54  ;;  %v837_v26 = vmul.f32 %v1083_v24, %v700_v11  ;;  %v285_v27 = vpop.f32.mrb[1].mxu0  ;;  %v405_v28 = vpop.f32.mrb[1].mxu1 }
  0xf2   :  { %v812_v29 = vmul.f32 %v575_v52, %v285_v27  ;;  %v836_v30 = vmul.f32 %v695_v12, %v405_v28  ;;  %v780_v23 = vpop.permute.xlu1 %779  ;;  %v775_v24 = vpop.permute.xlu0 %774 }
  0xf3   :  { %862 = vst.msk [vmem:[%s1819_s3 + $0x8] sm:$0xff] %vm860_vm1, %v813_v25  ;;  %886 = vst.msk [vmem:[%s1819_s3 + $0xc8] sm:$0xff] %vm860_vm1, %v837_v26 }
  0xf4   :  { %861 = vst.msk [vmem:[%s1819_s3] sm:$0xff] %vm860_vm1, %v812_v29  ;;  %885 = vst.msk [vmem:[%s1819_s3 + $0xc0] sm:$0xff] %vm860_vm1, %v836_v30  ;;  %v1050_v33 = vpop.f32.mrb[2].mxu0  ;;  %v1086_v34 = vpop.f32.mrb[2].mxu1 }
  0xf5   :  { %v815_v35 = vmul.f32 %v1050_v33, %v590_v53  ;;  %v839_v36 = vmul.f32 %v1086_v34, %v710_v13  ;;  %v295_v37 = vpop.f32.mrb[3].mxu0  ;;  %v415_v38 = vpop.f32.mrb[3].mxu1 }
  0xf6   :  { %v814_v39 = vmul.f32 %v585_v51, %v295_v37  ;;  %v838_v40 = vmul.f32 %v705_v14, %v415_v38 }
  0xf7   :  { %864 = vst.msk [vmem:[%s1819_s3 + $0x18] sm:$0xff] %vm860_vm1, %v815_v35  ;;  %888 = vst.msk [vmem:[%s1819_s3 + $0xd8] sm:$0xff] %vm860_vm1, %v839_v36  ;;  %v790_v35 = vpop.permute.xlu1 %789  ;;  %v785_v36 = vpop.permute.xlu0 %784 }
  0xf8   :  { %863 = vst.msk [vmem:[%s1819_s3 + $0x10] sm:$0xff] %vm860_vm1, %v814_v39  ;;  %887 = vst.msk [vmem:[%s1819_s3 + $0xd0] sm:$0xff] %vm860_vm1, %v838_v40  ;;  %v1053_v41 = vpop.f32.mrb[4].mxu0  ;;  %v1089_v42 = vpop.f32.mrb[4].mxu1 }
  0xf9   :  { %v817_v43 = vmul.f32 %v1053_v41, %v600_v55  ;;  %v841_v44 = vmul.f32 %v1089_v42, %v720_v15  ;;  %v305_v45 = vpop.f32.mrb[5].mxu0  ;;  %v425_v46 = vpop.f32.mrb[5].mxu1 }
  0xfa   :  { %v816_v47 = vmul.f32 %v1549_v56, %v305_v45  ;;  %v840_v48 = vmul.f32 %v715_v16, %v425_v46 }
  0xfb   :  { %866 = vst.msk [vmem:[%s1819_s3 + $0x28] sm:$0xff] %vm860_vm1, %v817_v43  ;;  %890 = vst.msk [vmem:[%s1819_s3 + $0xe8] sm:$0xff] %vm860_vm1, %v841_v44 }
  0xfc   :  { %865 = vst.msk [vmem:[%s1819_s3 + $0x20] sm:$0xff] %vm860_vm1, %v816_v47  ;;  %889 = vst.msk [vmem:[%s1819_s3 + $0xe0] sm:$0xff] %vm860_vm1, %v840_v48  ;;  %v1056_v51 = vpop.f32.mrb[6].mxu0  ;;  %v1092_v52 = vpop.f32.mrb[6].mxu1 }
  0xfd   :  { %v819_v53 = vmul.f32 %v1056_v51, %v1551_v57  ;;  %v843_v54 = vmul.f32 %v1092_v52, %v730_v17  ;;  %v315_v55 = vpop.f32.mrb[7].mxu0  ;;  %v435_v56 = vpop.f32.mrb[7].mxu1 }
  0xfe   :  { %v818_v11 = vmul.f32 %v1553_v58, %v315_v55  ;;  %v842_v12 = vmul.f32 %v725_v18, %v435_v56  ;;  %v800_v47 = vpop.permute.xlu1 %799  ;;  %v795_v48 = vpop.permute.xlu0 %794 }
  0xff   :  { %868 = vst.msk [vmem:[%s1819_s3 + $0x38] sm:$0xff] %vm860_vm1, %v819_v53  ;;  %892 = vst.msk [vmem:[%s1819_s3 + $0xf8] sm:$0xff] %vm860_vm1, %v843_v54 }
 0x100   :  { %867 = vst.msk [vmem:[%s1819_s3 + $0x30] sm:$0xff] %vm860_vm1, %v818_v11  ;;  %891 = vst.msk [vmem:[%s1819_s3 + $0xf0] sm:$0xff] %vm860_vm1, %v842_v12  ;;  %v1059_v57 = vpop.f32.mrb[8].mxu0  ;;  %v1095_v58 = vpop.f32.mrb[8].mxu1 }
 0x101   :  { %v821_v13 = vmul.f32 %v1059_v57, %v1555_v59  ;;  %v845_v14 = vmul.f32 %v1095_v58, %v740_v19  ;;  %v325_v15 = vpop.f32.mrb[9].mxu0  ;;  %v445_v16 = vpop.f32.mrb[9].mxu1 }
 0x102   :  { %v820_v17 = vmul.f32 %v1557_v60, %v325_v15  ;;  %v844_v18 = vmul.f32 %v1587_v20, %v445_v16 }
 0x103   :  { %870 = vst.msk [vmem:[%s1819_s3 + $0x48] sm:$0xff] %vm860_vm1, %v821_v13  ;;  %894 = vst.msk [vmem:[%s1819_s3 + $0x108] sm:$0xff] %vm860_vm1, %v845_v14  ;;  %v810_v13 = vpop.permute.xlu1 %809  ;;  %v805_v14 = vpop.permute.xlu0 %804 }
 0x104   :  { %869 = vst.msk [vmem:[%s1819_s3 + $0x40] sm:$0xff] %vm860_vm1, %v820_v17  ;;  %893 = vst.msk [vmem:[%s1819_s3 + $0x100] sm:$0xff] %vm860_vm1, %v844_v18  ;;  %v1062_v59 = vpop.f32.mrb[10].mxu0  ;;  %v1098_v60 = vpop.f32.mrb[10].mxu1 }
 0x105   :  { %v823_v19 = vmul.f32 %v1062_v59, %v1559_v61  ;;  %v847_v20 = vmul.f32 %v1098_v60, %v1589_v21  ;;  %v335_v25 = vpop.f32.mrb[11].mxu0  ;;  %v455_v26 = vpop.f32.mrb[11].mxu1 }
 0x106   :  { %v822_v27 = vmul.f32 %v1561_v62, %v335_v25  ;;  %v846_v28 = vmul.f32 %v1591_v22, %v455_v26 }
 0x107   :  { %872 = vst.msk [vmem:[%s1819_s3 + $0x58] sm:$0xff] %vm860_vm1, %v823_v19  ;;  %896 = vst.msk [vmem:[%s1819_s3 + $0x118] sm:$0xff] %vm860_vm1, %v847_v20 }
 0x108   :  { %871 = vst.msk [vmem:[%s1819_s3 + $0x50] sm:$0xff] %vm860_vm1, %v822_v27  ;;  %895 = vst.msk [vmem:[%s1819_s3 + $0x110] sm:$0xff] %vm860_vm1, %v846_v28  ;;  %v1065_v61 = vpop.f32.mrb[12].mxu0  ;;  %v1101_v62 = vpop.f32.mrb[12].mxu1 }
 0x109   :  { %v825_v21 = vmul.f32 %v1065_v61, %v1563_v63  ;;  %v849_v22 = vmul.f32 %v1101_v62, %v1593_v31  ;;  %v345_v29 = vpop.f32.mrb[13].mxu0  ;;  %v465_v30 = vpop.f32.mrb[13].mxu1 }
 0x10a   :  { %v824_v33 = vmul.f32 %v1565_v0, %v345_v29  ;;  %v848_v34 = vmul.f32 %v1595_v32, %v465_v30 }
 0x10b   :  { %874 = vst.msk [vmem:[%s1819_s3 + $0x68] sm:$0xff] %vm860_vm1, %v825_v21  ;;  %898 = vst.msk [vmem:[%s1819_s3 + $0x128] sm:$0xff] %vm860_vm1, %v849_v22 }
 0x10c   :  { %873 = vst.msk [vmem:[%s1819_s3 + $0x60] sm:$0xff] %vm860_vm1, %v824_v33  ;;  %897 = vst.msk [vmem:[%s1819_s3 + $0x120] sm:$0xff] %vm860_vm1, %v848_v34  ;;  %v1068_v63 = vpop.f32.mrb[14].mxu0  ;;  %v1104_v0 = vpop.f32.mrb[14].mxu1 }
 0x10d   :  { %v827_v31 = vmul.f32 %v1068_v63, %v1567_v1  ;;  %v851_v32 = vmul.f32 %v1104_v0, %v770_v49  ;;  %v355_v37 = vpop.f32.mrb[15].mxu0  ;;  %v475_v38 = vpop.f32.mrb[15].mxu1 }
 0x10e   :  { %v826_v39 = vmul.f32 %v1569_v2, %v355_v37  ;;  %v850_v40 = vmul.f32 %v1630_v50, %v475_v38 }
 0x10f   :  { %876 = vst.msk [vmem:[%s1819_s3 + $0x78] sm:$0xff] %vm860_vm1, %v827_v31  ;;  %900 = vst.msk [vmem:[%s1819_s3 + $0x138] sm:$0xff] %vm860_vm1, %v851_v32 }
 0x110   :  { %875 = vst.msk [vmem:[%s1819_s3 + $0x70] sm:$0xff] %vm860_vm1, %v826_v39  ;;  %899 = vst.msk [vmem:[%s1819_s3 + $0x130] sm:$0xff] %vm860_vm1, %v850_v40  ;;  %v1071_v1 = vpop.f32.mrb[16].mxu0  ;;  %v1107_v2 = vpop.f32.mrb[16].mxu1 }
 0x111   :  { %v829_v41 = vmul.f32 %v1071_v1, %v1571_v3  ;;  %v853_v42 = vmul.f32 %v1107_v2, %v780_v23  ;;  %v365_v43 = vpop.f32.mrb[17].mxu0  ;;  %v485_v44 = vpop.f32.mrb[17].mxu1 }
 0x112   :  { %v828_v45 = vmul.f32 %v1573_v4, %v365_v43  ;;  %v852_v46 = vmul.f32 %v775_v24, %v485_v44 }
 0x113   :  { %878 = vst.msk [vmem:[%s1819_s3 + $0x88] sm:$0xff] %vm860_vm1, %v829_v41  ;;  %902 = vst.msk [vmem:[%s1819_s3 + $0x148] sm:$0xff] %vm860_vm1, %v853_v42 }
 0x114   :  { %877 = vst.msk [vmem:[%s1819_s3 + $0x80] sm:$0xff] %vm860_vm1, %v828_v45  ;;  %901 = vst.msk [vmem:[%s1819_s3 + $0x140] sm:$0xff] %vm860_vm1, %v852_v46  ;;  %v1074_v3 = vpop.f32.mrb[18].mxu0  ;;  %v1110_v4 = vpop.f32.mrb[18].mxu1 }
 0x115   :  { %v831_v49 = vmul.f32 %v1074_v3, %v1575_v5  ;;  %v855_v50 = vmul.f32 %v1110_v4, %v790_v35  ;;  %v375_v51 = vpop.f32.mrb[19].mxu0  ;;  %v495_v52 = vpop.f32.mrb[19].mxu1 }
 0x116   :  { %v830_v53 = vmul.f32 %v1577_v6, %v375_v51  ;;  %v854_v54 = vmul.f32 %v785_v36, %v495_v52 }
 0x117   :  { %880 = vst.msk [vmem:[%s1819_s3 + $0x98] sm:$0xff] %vm860_vm1, %v831_v49  ;;  %904 = vst.msk [vmem:[%s1819_s3 + $0x158] sm:$0xff] %vm860_vm1, %v855_v50 }
 0x118   :  { %879 = vst.msk [vmem:[%s1819_s3 + $0x90] sm:$0xff] %vm860_vm1, %v830_v53  ;;  %903 = vst.msk [vmem:[%s1819_s3 + $0x150] sm:$0xff] %vm860_vm1, %v854_v54  ;;  %v1077_v5 = vpop.f32.mrb[20].mxu0  ;;  %v1113_v6 = vpop.f32.mrb[20].mxu1 }
 0x119   :  { %v833_v55 = vmul.f32 %v1077_v5, %v1579_v7  ;;  %v857_v56 = vmul.f32 %v1113_v6, %v800_v47  ;;  %v385_v11 = vpop.f32.mrb[21].mxu0  ;;  %v505_v12 = vpop.f32.mrb[21].mxu1 }
 0x11a   :  { %v832_v57 = vmul.f32 %v1581_v8, %v385_v11  ;;  %v856_v58 = vmul.f32 %v795_v48, %v505_v12 }
 0x11b   :  { %882 = vst.msk [vmem:[%s1819_s3 + $0xa8] sm:$0xff] %vm860_vm1, %v833_v55  ;;  %906 = vst.msk [vmem:[%s1819_s3 + $0x168] sm:$0xff] %vm860_vm1, %v857_v56 }
 0x11c   :  { %881 = vst.msk [vmem:[%s1819_s3 + $0xa0] sm:$0xff] %vm860_vm1, %v832_v57  ;;  %905 = vst.msk [vmem:[%s1819_s3 + $0x160] sm:$0xff] %vm860_vm1, %v856_v58  ;;  %v1080_v7 = vpop.f32.mrb[22].mxu0  ;;  %v1116_v8 = vpop.f32.mrb[22].mxu1 }
 0x11d   :  { %v835_v15 = vmul.f32 %v1080_v7, %v1583_v9  ;;  %v859_v16 = vmul.f32 %v1116_v8, %v810_v13  ;;  %v395_v17 = vpop.f32.mrb[23].mxu0  ;;  %v515_v18 = vpop.f32.mrb[23].mxu1 }
 0x11e   :  { %v834_v23 = vmul.f32 %v1585_v10, %v395_v17  ;;  %v858_v24 = vmul.f32 %v805_v14, %v515_v18 }
 0x11f   :  { %884 = vst.msk [vmem:[%s1819_s3 + $0xb8] sm:$0xff] %vm860_vm1, %v835_v15  ;;  %908 = vst.msk [vmem:[%s1819_s3 + $0x178] sm:$0xff] %vm860_vm1, %v859_v16 }
 0x120   :  { %883 = vst.msk [vmem:[%s1819_s3 + $0xb0] sm:$0xff] %vm860_vm1, %v834_v23  ;;  %907 = vst.msk [vmem:[%s1819_s3 + $0x170] sm:$0xff] %vm860_vm1, %v858_v24 }

</bundles_post_ra>
